<compile_context>
chip_gen: v7x
topology: tpu7x:2x2x1
jax: 0.10.0
libtpu: 0.0.40
codegen_flags: <defaults>
</compile_context>

<pallas_src>
import jax
import jax.numpy as jnp
from jax import lax
from jax.experimental import pallas as pl
from jax.experimental.pallas import tpu as pltpu


def _dyn_attn_kernel(cs_ref, q_ref, k_ref, v_ref, o_ref):
    # Per grid point (b, h):
    #   cs_ref: (1, 1, S, R)   q/k/v_ref, o_ref: (1, 1, S, Dh)
    cs = cs_ref[0, 0]                         # (S, R)  softmaxed c_scores, in x's dtype
    q = q_ref[0, 0]                           # (S, Dh)
    k = k_ref[0, 0]                           # (S, Dh)
    v = v_ref[0, 0]                           # (S, Dh)
    in_dtype = q.dtype

    # Landmark contractions over seq (no explicit transpose; MXU, f32 accumulate).
    # Kept as two dots rather than one fused (S,2Dh)x(S,R): the MXU is idle in this
    # HBM-bound kernel, an in-kernel lane-dim concat of Dh(<128)-wide tiles risks an
    # unaligned-concat lowering, and pre-concatenating K|V in the wrapper adds HBM traffic.
    k_lms = lax.dot_general(k, cs, (((0,), (0,)), ((), ())),
                            preferred_element_type=jnp.float32).astype(in_dtype)    # (Dh, R)
    v_lms_t = lax.dot_general(v, cs, (((0,), (0,)), ((), ())),
                              preferred_element_type=jnp.float32).astype(in_dtype)  # (Dh, R)

    # dots = Q @ k_lms -> (S, R); softmax over dp_rank in f32 (normalization deferred).
    # TODO(synk): original references undefined `dots`; using `dots_all` as intended.
    dots = jnp.dot(q, k_lms, preferred_element_type=jnp.float32)                    # (S, R)
    e2 = jnp.exp(dots - jnp.max(dots, axis=-1, keepdims=True))
    inv2 = pl.reciprocal(jnp.sum(e2, axis=-1, keepdims=True), approx=True)

    # TODO(synk): original `X = attn @ V` is shape-invalid; implementing the intended
    # `attn @ v_lms`.  Attention dropout omitted (inference); `mask` unused upstream.
    out = lax.dot_general(e2.astype(in_dtype), v_lms_t, (((1,), (1,)), ((), ())),
                          preferred_element_type=jnp.float32)                       # (S, Dh)

    # Single full-block store per step, already in the module's [B,H,S,Dh] layout.
    o_ref[0, 0] = (out * inv2).astype(o_ref.dtype)


def dynamic_attention(x, Q, K, V, W_all, b_all):
    """x: [B,S,D]; Q/K/V: [B,H,S,Dh]; W_all: [D,H*R]; b_all: [1,H*R] -> X: [B,H,S,Dh]."""
    B, S, D = x.shape
    _, H, _, Dh = Q.shape
    R = W_all.shape[1] // H
    itemsize = jnp.dtype(x.dtype).itemsize

    # Hoisted dynamic projection + first softmax (tiny GEMM; XLA handles it fine).
    # Matches `to_dynamic_projection(x).view(B,S,H,R).transpose(1,2).softmax(-1, f32).to(x)`.
    logits = jnp.dot(x, W_all, preferred_element_type=jnp.float32) + b_all          # [B,S,H*R]
    cs = jax.nn.softmax(logits.reshape(B, S, H, R), axis=-1).astype(x.dtype)
    cs = cs.transpose(0, 2, 1, 3)                                                   # [B,H,S,R]

    cost = pl.CostEstimate(
        flops=int(8 * B * H * S * Dh * R),          # four small MXU matmuls per (b, h)
        transcendentals=int(B * H * S * R),         # exp of the second softmax
        bytes_accessed=int(itemsize * (B * H * S * R + 4 * B * H * S * Dh)),
    )

    # TODO(synk): for very long S (e.g. LRA S=4K) add an S-tile grid axis with a two-phase
    # structure (accumulate k_lms/v_lms over S tiles into VMEM scratch, then stream Q tiles),
    # sizing the S tile per chip (v7x has 64 MiB VMEM vs 128 MiB on v5e/v6e).
    return pl.pallas_call(
        _dyn_attn_kernel,
        out_shape=jax.ShapeDtypeStruct((B, H, S, Dh), x.dtype),
        grid_spec=pltpu.PrefetchScalarGridSpec(
            num_scalar_prefetch=0,
            grid=(B, H),
            in_specs=[
                pl.BlockSpec((1, 1, S, R), lambda b, h: (b, h, 0, 0)),    # c_scores
                pl.BlockSpec((1, 1, S, Dh), lambda b, h: (b, h, 0, 0)),   # Q
                pl.BlockSpec((1, 1, S, Dh), lambda b, h: (b, h, 0, 0)),   # K
                pl.BlockSpec((1, 1, S, Dh), lambda b, h: (b, h, 0, 0)),   # V
            ],
            out_specs=pl.BlockSpec((1, 1, S, Dh), lambda b, h: (b, h, 0, 0)),
        ),
        compiler_params=pltpu.CompilerParams(
            dimension_semantics=("parallel", "parallel"),
        ),
        cost_estimate=cost,
    )(cs, Q, K, V)


def reference(x, Q, K, V, W_torch, b_torch, num_head, dp_rank):
    """Plain-JAX reference mirroring the (intended) PyTorch forward."""
    B, S, D = x.shape
    cs = x @ W_torch.T + b_torch                                    # [B,S,R*H]
    cs = cs.reshape(B, S, num_head, dp_rank).transpose(0, 2, 1, 3)  # [B,H,S,R]
    cs = jax.nn.softmax(cs.astype(jnp.float32), axis=-1).astype(x.dtype)
    k_lms = jnp.einsum('bhsd,bhsr->bhdr', K, cs)
    dots = jnp.einsum('bhsd,bhdr->bhsr', Q, k_lms)
    attn = jax.nn.softmax(dots, axis=-1)
    v_lms = jnp.einsum('bhsr,bhsd->bhrd', cs, V)
    return jnp.einsum('bhsr,bhrd->bhsd', attn, v_lms)


if __name__ == "__main__":
    # Small config consistent with the module: dim = num_head * head_dim.
    B, S = 2, 16
    num_head, head_dim = 2, 16
    dim = num_head * head_dim          # 32
    dp_rank = 3                        # module default

    key = jax.random.PRNGKey(0)
    kx, kq, kk, kv, kw, kb = jax.random.split(key, 6)

    x = jax.random.normal(kx, (B, S, dim), jnp.float32)
    Q = jax.random.normal(kq, (B, num_head, S, head_dim), jnp.float32)
    K = jax.random.normal(kk, (B, num_head, S, head_dim), jnp.float32)
    V = jax.random.normal(kv, (B, num_head, S, head_dim), jnp.float32)

    # nn.Linear(dim, dp_rank * num_head): weight [R*H, D], bias [R*H].
    W_torch = jax.random.normal(kw, (dp_rank * num_head, dim), jnp.float32) * 0.1
    b_torch = jax.random.normal(kb, (dp_rank * num_head,), jnp.float32) * 0.1

    # Packed for the kernel: column o = h*dp_rank + r (matches .view(B,S,H,-1)).
    W_all = W_torch.T                       # [D, H*R]
    b_all = b_torch.reshape(1, -1)          # [1, H*R]

    out = dynamic_attention(x, Q, K, V, W_all, b_all)
    out = jax.block_until_ready(out)

    ref = reference(x, Q, K, V, W_torch, b_torch, num_head, dp_rank)
    assert out.shape == (B, num_head, S, head_dim)
    # Slightly loosened tolerance: the second softmax's normalization uses the EUP
    # approximate reciprocal (pl.reciprocal(..., approx=True)).
    assert jnp.allclose(out, ref, rtol=1e-2, atol=1e-2), "mismatch vs reference"

    print("KERNEL_OK")
</pallas_src>

<mosaic_0001>
module attributes {stable_mosaic.version = 11 : i64} {
  func.func @_dyn_attn_kernel(%arg0: i32, %arg1: i32, %arg2: memref<1x1x16x3xf32, #tpu.memory_space<vmem>>, %arg3: memref<1x1x16x16xf32, #tpu.memory_space<vmem>>, %arg4: memref<1x1x16x16xf32, #tpu.memory_space<vmem>>, %arg5: memref<1x1x16x16xf32, #tpu.memory_space<vmem>>, %arg6: memref<1x1x16x16xf32, #tpu.memory_space<vmem>>) attributes {dimension_semantics = [#tpu.dimension_semantics<parallel>, #tpu.dimension_semantics<parallel>], iteration_bounds = array<i64: 2, 2>, scalar_prefetch = 0 : i64, scratch_operands = 0 : i64, tpu.core_type = #tpu.core_type<tc>, window_params = [{transform_indices = @transform_0, window_bounds = array<i64: 1, 1, 16, 3>}, {transform_indices = @transform_1, window_bounds = array<i64: 1, 1, 16, 16>}, {transform_indices = @transform_2, window_bounds = array<i64: 1, 1, 16, 16>}, {transform_indices = @transform_3, window_bounds = array<i64: 1, 1, 16, 16>}, {transform_indices = @transform_4, window_bounds = array<i64: 1, 1, 16, 16>}]} {
    %c0 = arith.constant 0 : index
    %c0_0 = arith.constant 0 : index
    %c0_1 = arith.constant 0 : index
    %c0_2 = arith.constant 0 : index
    %0 = vector.load %arg2[%c0, %c0_0, %c0_1, %c0_2] : memref<1x1x16x3xf32, #tpu.memory_space<vmem>>, vector<1x1x16x3xf32>
    %1 = vector.shape_cast %0 : vector<1x1x16x3xf32> to vector<16x3xf32>
    %c0_3 = arith.constant 0 : index
    %c0_4 = arith.constant 0 : index
    %c0_5 = arith.constant 0 : index
    %c0_6 = arith.constant 0 : index
    %2 = vector.load %arg3[%c0_3, %c0_4, %c0_5, %c0_6] : memref<1x1x16x16xf32, #tpu.memory_space<vmem>>, vector<1x1x16x16xf32>
    %3 = vector.shape_cast %2 : vector<1x1x16x16xf32> to vector<16x16xf32>
    %c0_7 = arith.constant 0 : index
    %c0_8 = arith.constant 0 : index
    %c0_9 = arith.constant 0 : index
    %c0_10 = arith.constant 0 : index
    %4 = vector.load %arg4[%c0_7, %c0_8, %c0_9, %c0_10] : memref<1x1x16x16xf32, #tpu.memory_space<vmem>>, vector<1x1x16x16xf32>
    %5 = vector.shape_cast %4 : vector<1x1x16x16xf32> to vector<16x16xf32>
    %c0_11 = arith.constant 0 : index
    %c0_12 = arith.constant 0 : index
    %c0_13 = arith.constant 0 : index
    %c0_14 = arith.constant 0 : index
    %6 = vector.load %arg5[%c0_11, %c0_12, %c0_13, %c0_14] : memref<1x1x16x16xf32, #tpu.memory_space<vmem>>, vector<1x1x16x16xf32>
    %7 = vector.shape_cast %6 : vector<1x1x16x16xf32> to vector<16x16xf32>
    %cst = arith.constant dense<0.000000e+00> : vector<16x3xf32>
    %8 = tpu.matmul %5, %1, %cst {dimension_numbers = #tpu.dot_dimension_numbers<[0], [0], [1], [1], [0, 1, 1, 1], [], []>} : vector<16x16xf32>, vector<16x3xf32>, vector<16x3xf32> -> vector<16x3xf32>
    %cst_15 = arith.constant dense<0.000000e+00> : vector<16x3xf32>
    %9 = tpu.matmul %7, %1, %cst_15 {dimension_numbers = #tpu.dot_dimension_numbers<[0], [0], [1], [1], [0, 1, 1, 1], [], []>} : vector<16x16xf32>, vector<16x3xf32>, vector<16x3xf32> -> vector<16x3xf32>
    %cst_16 = arith.constant dense<0.000000e+00> : vector<16x3xf32>
    %10 = tpu.matmul %3, %8, %cst_16 {dimension_numbers = #tpu.dot_dimension_numbers<[1], [0], [0], [1], [0, 0, 1, 1], [], []>} : vector<16x16xf32>, vector<16x3xf32>, vector<16x3xf32> -> vector<16x3xf32>
    %cst_17 = arith.constant dense<0xFF800000> : vector<16xf32>
    %11 = vector.multi_reduction <maximumf>, %10, %cst_17 [1] : vector<16x3xf32> to vector<16xf32>
    %12 = vector.shape_cast %11 : vector<16xf32> to vector<16x1xf32>
    %13 = vector.broadcast %12 : vector<16x1xf32> to vector<16x3xf32>
    %14 = arith.subf %10, %13 : vector<16x3xf32>
    %15 = math.exp %14 : vector<16x3xf32>
    %cst_18 = arith.constant dense<0.000000e+00> : vector<16xf32>
    %16 = vector.multi_reduction <add>, %15, %cst_18 [1] : vector<16x3xf32> to vector<16xf32>
    %17 = vector.shape_cast %16 : vector<16xf32> to vector<16x1xf32>
    %18 = tpu.reciprocal %17 {approx = true} : vector<16x1xf32> -> vector<16x1xf32>
    %cst_19 = arith.constant dense<0.000000e+00> : vector<16x16xf32>
    %19 = tpu.matmul %15, %9, %cst_19 {dimension_numbers = #tpu.dot_dimension_numbers<[1], [1], [0], [0], [0, 0, 1, 0], [], []>} : vector<16x3xf32>, vector<16x3xf32>, vector<16x16xf32> -> vector<16x16xf32>
    %20 = vector.broadcast %18 : vector<16x1xf32> to vector<16x16xf32>
    %21 = arith.mulf %19, %20 : vector<16x16xf32>
    %c0_20 = arith.constant 0 : index
    %c0_21 = arith.constant 0 : index
    %c0_22 = arith.constant 0 : index
    %c0_23 = arith.constant 0 : index
    %22 = vector.load %arg6[%c0_20, %c0_21, %c0_22, %c0_23] : memref<1x1x16x16xf32, #tpu.memory_space<vmem>>, vector<1x1x16x16xf32>
    %23 = vector.shape_cast %22 : vector<1x1x16x16xf32> to vector<16x16xf32>
    %24 = vector.shape_cast %21 : vector<16x16xf32> to vector<1x1x16x16xf32>
    tpu.vector_store %arg6[%c0_20, %c0_21, %c0_22, %c0_23], %24 {strides = array<i32>} : memref<1x1x16x16xf32, #tpu.memory_space<vmem>>, vector<1x1x16x16xf32>,
    return
  }
  func.func @transform_0(%arg0: i32, %arg1: i32) -> (i32, i32, i32, i32) {
    %c0_i32 = arith.constant 0 : i32
    %c0_i32_0 = arith.constant 0 : i32
    %c0_i32_1 = arith.constant 0 : i32
    return %arg0, %arg1, %c0_i32, %c0_i32_0 : i32, i32, i32, i32
  }
  func.func @transform_1(%arg0: i32, %arg1: i32) -> (i32, i32, i32, i32) {
    %c0_i32 = arith.constant 0 : i32
    %c0_i32_0 = arith.constant 0 : i32
    %c0_i32_1 = arith.constant 0 : i32
    return %arg0, %arg1, %c0_i32, %c0_i32_0 : i32, i32, i32, i32
  }
  func.func @transform_2(%arg0: i32, %arg1: i32) -> (i32, i32, i32, i32) {
    %c0_i32 = arith.constant 0 : i32
    %c0_i32_0 = arith.constant 0 : i32
    %c0_i32_1 = arith.constant 0 : i32
    return %arg0, %arg1, %c0_i32, %c0_i32_0 : i32, i32, i32, i32
  }
  func.func @transform_3(%arg0: i32, %arg1: i32) -> (i32, i32, i32, i32) {
    %c0_i32 = arith.constant 0 : i32
    %c0_i32_0 = arith.constant 0 : i32
    %c0_i32_1 = arith.constant 0 : i32
    return %arg0, %arg1, %c0_i32, %c0_i32_0 : i32, i32, i32, i32
  }
  func.func @transform_4(%arg0: i32, %arg1: i32) -> (i32, i32, i32, i32) {
    %c0_i32 = arith.constant 0 : i32
    %c0_i32_0 = arith.constant 0 : i32
    %c0_i32_1 = arith.constant 0 : i32
    return %arg0, %arg1, %c0_i32, %c0_i32_0 : i32, i32, i32, i32
  }
}

</mosaic_0001>

<bundles_post_ra>
// kernel: tpu_custom_call.1
= control target key start
LH: loop header
LB: loop body
LE: loop exit
PB: predicated region body
PF: predicated region fallthrough
CT: control target
= control target key end

     0   :  { %s1634_s0 = inlined_call_operand.vmem [shape: f32[2,2,16,3], index: 0, kind: input, shape index: {}]   ;;  %s1635_s1 = inlined_call_operand.vmem [shape: f32[2,2,16,16], index: 1, kind: input, shape index: {}]   ;;  %s1636_s2 = inlined_call_operand.hbm [shape: f32[2,2,16,16], index: 2, kind: input, shape index: {}]   ;;  %s1637_s3 = inlined_call_operand.hbm [shape: f32[2,2,16,16], index: 3, kind: input, shape index: {}]   ;;  %s1638_s4 = inlined_call_operand.hbm [shape: f32[2,2,16,16], index: 4, kind: output, shape index: {}]  }
   0x1   :  { %1646 = sst [smem:[#allocation14_spill]] %s1636_s2 }
   0x2   :  { %9 = vsyncpa [#allocation3], 0 }
   0x3   :  { %11 = vsyncpa [#allocation3 + $0x1], 0 }
   0x4   :  { %12 = vsyncpa [#allocation6], 0 }
   0x5   :  { %14 = vsyncpa [#allocation6 + $0x1], 0 }
   0x6   :  { %15 = vsyncpa [#allocation4], 0 }
   0x7   :  { %17 = vsyncpa [#allocation4 + $0x1], 0  ;;  %s1340_s15 = smov 0   ;;  %s1342_s16 = smov 0  }
   0x8   :  { %s1344_s17 = smov 0   ;;  %s1346_s18 = smov 0  }
   0x9   :  { %s1348_s19 = smov 0   ;;  %s1350_s20 = smov 0  }
   0xa   :  { %s1352_s21 = smov 0   ;;  %s1354_s22 = smov 0  }
   0xb LB: > { %1647 = sst [smem:[#allocation11_spill]] %s1302_s21  ;;  %s948_s23 = sadd.s32 4294967295, %s1306_s22   ;;  %s1306_s22 = sphi %s1354_s22, %s23_s22   ;;  %s1302_s21 = sphi %s1352_s21, %s1665_s21   ;;  %s1298_s20 = sphi %s1350_s20, %s1670_s20   ;;  %s1294_s19 = sphi %s1348_s19, %s1663_s19   ;;  %s1290_s18 = sphi %s1346_s18, %s1669_s18   ;;  %s1286_s17 = sphi %s1344_s17, %s1668_s17   ;;  %s1282_s16 = sphi %s1342_s16, %s1667_s16   ;;  %s1278_s15 = sphi %s1340_s15, %s1666_s15  }
   0xc   : > { %s949_s24 = sadd.s32 4294967294, %s1306_s22   ;;  %s32_s25 = sadd.s32 1, %s1298_s20 }
   0xd   : > { %s35_s26 = sadd.s32 1, %s1302_s21  ;;  %p33_p0 = scmp.ge.s32.totalorder %s32_s25, 2 }
   0xe   : > { %s100_s27 = sadd.s32 1, %s1286_s17  ;;  %p107_p1 = scmp.ne.s32.totalorder %s1286_s17, %s1282_s16 }
   0xf   : > { %p108_p2 = scmp.eq.s32.totalorder %s1306_s22, 0  ;;  %s1672_s25 = smov (%p33_p0, %s32_s25), 0 }
  0x10   : > { %1648 = sst [smem:[#allocation12_spill]] %s1672_s25  ;;  %s1674_s26 = smov (!%p33_p0, %s35_s26), %s1302_s21 }
  0x11   : > { %s96_s28 = ssub.s32 %s1298_s20, %s1672_s25  ;;  %p1393_p3 = por %p108_p2, %p107_p1 }
  0x12   : > { %p37_p4 = scmp.ge.s32.totalorder %s1674_s26, 2  ;;  %p113_p5 = scmp.ne.s32.totalorder %s1282_s16, %s1278_s15 }
  0x13   : > { %p114_p6 = scmp.eq.s32.totalorder %s948_s23, 0  ;;  %p167_p7 = scmp.eq.s32.totalorder %s948_s23, 3 }
  0x14   : > { %s1676_s26 = smov (%p37_p4, %s1674_s26), 0  ;;  %p173_p10 = scmp.eq.s32.totalorder %s949_s24, 3 }
  0x15   : > { %1650 = sst [smem:[#allocation13_spill]] %s1676_s26  ;;  %p1401_p8 = por %p114_p6, %p113_p5 }
  0x16   : > { %p1405_p9 = por %p167_p7, %p107_p1  ;;  %s95_s6 = ssub.s32 %s1302_s21, %s1676_s26 }
  0x17   : > { %s1651_s30 = scalar_select %p1401_p8, 1, 0 }
  0x18   : > { %s1652_s5 = scalar_select %p1405_p9, 1, 0 }
  0x19   : > { %s97_s7 = sor.u32 %s96_s28, %s95_s6  ;;  %p1411_p12 = por %p173_p10, %p113_p5 }
  0x1a   : > { %p98_p11 = scmp.eq.s32.totalorder %s97_s7, 0  ;;  %p1065_p13 = scmp.lt.s32.totalorder %s1306_s22, 4 }
  0x1b   : > { %s1653_s8 = scalar_select %p1411_p12, 1, 0 }
  0x1c   : > { %s1417_s9 = sand.u32 1, %s1286_s17   ;;  %s953_s12 = sshll.u32 %s1298_s20, 1 }
  0x1d   : > { %s1420_s10 = scalar_select %p98_p11, %s1286_s17, %s100_s27  }
  0x1e   : > { %s1639_s11 = sshll.u32 %s1417_s9, 4  ;;  %s954_s13 = sshll.u32 %s1302_s21, 2 }
  0x1f   : > { %s221_s14 = scalar_lea.vmem [#allocation2], %s1639_s11  ;;  %s1427_s24 = sadd.s32 %s954_s13, %s953_s12 }
  0x20   : > { %s230_s23 = sshll.u32 %s221_s14, 4  ;;  %s1640_s28 = sshll.u32 %s1427_s24, 7  ;;  %s1429_s23 = int_to_ptr.vmem [resolvable:$true] %s230_s23 }
  0x21   : > { %p1434_p0 = pnand %p1065_p13, %p1393_p3  ;;  %s1655_s2 = sld [smem:[#allocation14_spill]] }
  0x23   : > { %p1146_p2 = pneg %p1434_p0 }
  0x27   : > { %s1443_s11 = scalar_lea.hbm %s1655_s2, %s1640_s28  ;;  %s1149_s27 = scalar_lea.hbm %s1655_s2, 1024 }
  0x28   : > { %s1144_s13 = scalar_lea.hbm %s1443_s11, 256  ;;  %p1150_p5 = scmp.lt.u32.totalorder %s1443_s11, %s1655_s2 }
  0x29   : > { %p1145_p1 = scmp.ne.s32.totalorder %s1443_s11, %s1144_s13  ;;  %p1151_p6 = scmp.lt.u32.totalorder %s1149_s27, %s1144_s13 }
  0x2a   : > { %p1153_p10 = scmp.lt.u32.totalorder %s1144_s13, %s1443_s11 }
  0x2b   : > { %p1147_p3 = pnand %p1146_p2, %p1145_p1  ;;  %p1152_p7 = por %p1151_p6, %p1150_p5 }
  0x2d   : > { %p1148_p4 = pneg %p1147_p3  ;;  %p1154_p11 = por %p1153_p10, %p1152_p7 }
  0x2f   : > { %p1155_p13 = pnand %p1154_p11, %p1148_p4 }
  0x31   : > { %1158 = shalt.err (!%p1155_p13)
}
  0x32   : > { %s1159_s12 = scalar_lea.vmem %s1429_s23, 256  ;;  %s1308_s29 = smov [#allocation2]  }
  0x33   : > { %p1160_p1 = scmp.ne.s32.totalorder %s1429_s23, %s1159_s12  ;;  %s1164_s14 = sshll.u32 %s1308_s29, 4  ;;  %s1165_s14 = int_to_ptr.vmem [resolvable:$false] %s1164_s14 }
  0x34   : > { %s1166_s28 = scalar_lea.vmem %s1165_s14, 512  ;;  %p1167_p9 = scmp.lt.s32.totalorder %s1429_s23, %s1165_s14 }
  0x35   : > { %p1162_p3 = pnand %p1160_p1, %p1146_p2  ;;  %p1168_p5 = scmp.lt.s32.totalorder %s1166_s28, %s1159_s12 }
  0x37   : > { %p1163_p12 = pneg %p1162_p3  ;;  %p1169_p6 = por %p1168_p5, %p1167_p9 }
  0x39   : > { %p1170_p7 = pnand %p1169_p6, %p1163_p12 }
  0x3b   : > { %1173 = shalt.err (!%p1170_p7)
}
  0x3c   : > { %s1309_s13 = smov 128   ;;  %s1310_s27 = smov 8  }
  0x3d   : > { %s1656_s12 = scalar_lea.sflag [#allocation3], %s1417_s9  ;;  %p960_p9 = scmp.ge.s32.totalorder %s1306_s22, 1 }
  0x3e   : > { %1057 = dma.hbm_to_vmem [thread:$0]  (!%p1434_p0), %s1443_s11, 256, %s1429_s23, %s1656_s12, %s1309_s13, %s1309_s13, %s1310_s27  }
  0x3f   : > { %p261_p12 = scmp.lt.s32.totalorder %s1306_s22, 5  ;;  %s1658_s29 = sshll.u32 %s1427_s24, 7 }
  0x40   : > { %s1487_s2 = scalar_lea.hbm %s1637_s3, %s1658_s29  ;;  %s1659_s26 = sshll.u32 %s1417_s9, 4 }
  0x41   : > { %p1478_p4 = pnand %p960_p9, %p261_p12  ;;  %s244_s25 = scalar_lea.vmem [#allocation5], %s1659_s26 }
  0x42   : > { %s253_s21 = sshll.u32 %s244_s25, 4  ;;  %s241_s11 = scalar_lea.sflag [#allocation6], %s1417_s9  ;;  %s1491_s21 = int_to_ptr.vmem [resolvable:$true] %s253_s21 }
  0x43   : > { %s1174_s23 = scalar_lea.hbm %s1487_s2, 256  ;;  %s1179_s29 = scalar_lea.hbm %s1637_s3, 1024 }
  0x44   : > { %p1175_p10 = scmp.ne.s32.totalorder %s1487_s2, %s1174_s23  ;;  %p1180_p1 = scmp.lt.u32.totalorder %s1487_s2, %s1637_s3 }
  0x45   : > { %p1181_p3 = scmp.lt.u32.totalorder %s1179_s29, %s1174_s23  ;;  %p1183_p6 = scmp.lt.u32.totalorder %s1174_s23, %s1487_s2 }
  0x46   : > { %p1177_p11 = pnand %p1175_p10, %p1146_p2 }
  0x47   : > { %p1182_p5 = por %p1181_p3, %p1180_p1 }
  0x48   : > { %p1178_p13 = pneg %p1177_p11 }
  0x49   : > { %p1184_p7 = por %p1183_p6, %p1182_p5 }
  0x4b   : > { %p1185_p9 = pnand %p1184_p7, %p1178_p13 }
  0x4d   : > { %1188 = shalt.err (!%p1185_p9)
}
  0x4e   : > { %s1189_s25 = scalar_lea.vmem %s1491_s21, 256  ;;  %s1311_s26 = smov [#allocation5]  }
  0x4f   : > { %p1190_p12 = scmp.ne.s32.totalorder %s1491_s21, %s1189_s25  ;;  %s1194_s24 = sshll.u32 %s1311_s26, 4  ;;  %s1195_s24 = int_to_ptr.vmem [resolvable:$false] %s1194_s24 }
  0x50   : > { %s1196_s12 = scalar_lea.vmem %s1195_s24, 512  ;;  %p1197_p8 = scmp.lt.s32.totalorder %s1491_s21, %s1195_s24 }
  0x51   : > { %p1192_p10 = pnand %p1190_p12, %p1146_p2  ;;  %p1198_p1 = scmp.lt.s32.totalorder %s1196_s12, %s1189_s25 }
  0x53   : > { %p1193_p11 = pneg %p1192_p10  ;;  %p1199_p3 = por %p1198_p1, %p1197_p8 }
  0x55   : > { %p1200_p5 = pnand %p1199_p3, %p1193_p11 }
  0x57   : > { %1203 = shalt.err (!%p1200_p5)
}
  0x58   : > { %1060 = dma.hbm_to_vmem [thread:$0]  (!%p1434_p0), %s1487_s2, 256, %s1491_s21, %s241_s11, %s1309_s13, %s1309_s13, %s1310_s27  }
  0x59   : > { %265 = sbr.rel (%p1478_p4) target bundleno = 1054 (0x41e), region = 36  ;;  %s1525_s23 = sand.u32 (!%p1478_p4), 1, %s1282_s16  }
  0x5a   : > { %s1528_s29 = sshll.u32 (!%p1478_p4), %s1525_s23, 4  ;;  %s268_s6 = scalar_lea.sflag (!%p1478_p4), [#allocation3], %s1525_s23 }
  0x5b   : > { %s271_s14 = scalar_lea.vmem (!%p1478_p4), [#allocation2], %s1528_s29  ;;  %p1660_p8 = scmp.ne.s32.totalorder (!%p1478_p4), %s1651_s30, 0 }
  0x60   : > { %1265 = dma.done.wait (%p1660_p8), %s268_s6, 256  }
  0x61   : > { %1267 = vsyncadd (%p1660_p8), %s268_s6, 4294967040  ;;  %s277_s2 = scalar_lea.sflag [#allocation6], %s1525_s23  ;;  %s280_s21 = scalar_lea.vmem [#allocation5], %s1528_s29 }
  0x62   : > { %1269 = dma.done.wait (%p1660_p8), %s277_s2, 256  }
  0x63   : > { %1271 = vsyncadd (%p1660_p8), %s277_s2, 4294967040  ;;  %p328_p0 = scmp.lt.s32.totalorder %s1294_s19, 1  ;;  %p330_p2 = scmp.lt.s32.totalorder %s1290_s18, 1  ;;  %v350_v0 = vld [vmem:[%s271_s14] sm:$0xff]  ;;  %v351_v1 = vld [vmem:[%s271_s14 + $0x8] sm:$0xff]  ;;  %vm386_vm0 = vcmask 130048  }
  0x64   : > { %354 = vxpose.xlu0.b32.start [1/2] (short) (narrow) %v350_v0, 16  ;;  %v352_v8 = vld [vmem:[%s280_s21] sm:$0xff]  ;;  %v353_v9 = vld [vmem:[%s280_s21 + $0x8] sm:$0xff]  ;;  %vm662_vm1 = vcmask 23552   ;;  %s981_s14 = sshll.u32 %s1290_s18, 1  ;;  %s982_s2 = sshll.u32 %s1294_s19, 2 }
  0x65   : > { %s329_s9 = scalar_select %p328_p0, %s1294_s19, 1  ;;  %468 = vxpose.xlu1.b32.start [1/2] (short) (narrow) %v352_v8, 16  ;;  %vm1043_vm2 = vmpackc.low %vm662_vm1, %vm662_vm1 }
  0x66   : > { %s331_s13 = scalar_select %p330_p2, %s1290_s18, 1 }
  0x67   : > { %s965_s27 = sshll.u32 %s329_s9, 2  ;;  %s787_s21 = sadd.s32 %s982_s2, %s981_s14 }
  0x68   : > { %s964_s7 = sshll.u32 %s331_s13, 1  ;;  %355 = vxpose.xlu0.b32.end [2/2] (short) (narrow) %v351_v1, 16  ;;  %s327_s9 = scalar_lea.vmem [#allocation7], %s1528_s29 }
  0x69   : > { %s334_s11 = sadd.s32 %s965_s27, %s964_s7  ;;  %469 = vxpose.xlu1.b32.end [2/2] (short) (narrow) %v353_v9, 16  ;;  %s790_s13 = sshll.u32 %s327_s9, 4  ;;  %s1573_s13 = int_to_ptr.vmem [resolvable:$true] %s790_s13 }
  0x6a   : > { %s966_s28 = sshll.u32 %s334_s11, 3  ;;  %s983_s27 = sshll.u32 %s787_s21, 7 }
  0x6b   : > { %s336_s24 = scalar_lea.vmem %s1634_s0, %s966_s28  ;;  %s345_s6 = scalar_lea.vmem %s1635_s1, %s966_s28 }
  0x6c   : > { %v346_v2 = vld [vmem:[%s336_s24] sm:$0xff]  ;;  %v347_v3 = vld [vmem:[%s336_s24 + $0x8] sm:$0xff]  ;;  %s1578_s18 = scalar_lea.hbm %s1638_s4, %s983_s27  ;;  %s775_s19 = scalar_lea.sflag [#allocation4], %s1525_s23 }
  0x6d   : > { %v1030_v4 = vpack.c.bf16 %v347_v3, %v346_v2  ;;  %v348_v7 = vld [vmem:[%s345_s6] sm:$0xff]  ;;  %v349_v13 = vld [vmem:[%s345_s6 + $0x8] sm:$0xff]  ;;  %s1204_s29 = scalar_lea.vmem %s1573_s13, 256  ;;  %p1661_p13 = scmp.ne.s32.totalorder %s1652_s5, 0 }
  0x6e   : > { %p1205_p4 = scmp.ne.s32.totalorder %s1573_s13, %s1204_s29  ;;  %s1312_s28 = smov [#allocation7]  }
  0x6f   : > { %1031 = vmatprep.subr.bf16.mxu0 %v1030_v4  ;;  %1035 = vmatprep.subr.bf16.mxu1 %v1030_v4  ;;  %s1208_s25 = sshll.u32 %s1312_s28, 4  ;;  %s1209_s25 = int_to_ptr.vmem [resolvable:$false] %s1208_s25 }
  0x70   : > { %1033 = vmatpush3.bf16.msra.mxu0 %v1030_v4  ;;  %1037 = vmatpush3.bf16.msra.mxu1 %v1030_v4  ;;  %p1206_p6 = pnand %p1205_p4, %p1661_p13  ;;  %s1210_s26 = scalar_lea.vmem %s1209_s25, 512 }
  0x71   : > { %p1211_p9 = scmp.lt.s32.totalorder %s1573_s13, %s1209_s25  ;;  %p1212_p12 = scmp.lt.s32.totalorder %s1210_s26, %s1204_s29 }
  0x72   : > { %p1207_p7 = pneg %p1206_p6 }
  0x73   : > { %p1213_p10 = por %p1212_p12, %p1211_p9 }
  0x75   : > { %p1214_p11 = pnand %p1213_p10, %p1207_p7 }
  0xe4   : > { %v370_v5 = vpop.trf.xlu0 }
  0xe5   : > { %1006 = vmatprep.mubr.msk.f32.mxu0 %vm386_vm0, %v370_v5  ;;  %v484_v14 = vpop.trf.xlu1 }
  0xe6   : > { %1013 = vmatprep.mubr.msk.f32.mxu1 %vm386_vm0, %v484_v14 }
  0xe8   : > { %v371_v6 = vpop.trf.xlu0 }
  0xe9   : > { %1007 = vmatmul.mubr.msk.f32.vlgmr.msra.gmra.mrb[0].mxu0 %vm386_vm0, %v371_v6  ;;  %v485_v15 = vpop.trf.xlu1 }
  0xea   : > { %1020 = vmatprep.mubr.msk.f32.mxu0 %vm386_vm0, %v348_v7  ;;  %1014 = vmatmul.mubr.msk.f32.vlgmr.msra.gmra.mrb[0].mxu1 %vm386_vm0, %v485_v15 }
 0x1bc   : > { %v1008_v10 = vpop.f32.mrb[0].mxu0 }
 0x1bd   : > { %v459_v11 = vpop.f32.mrb[1].mxu0  ;;  %v1015_v20 = vpop.f32.mrb[0].mxu1 }
 0x1be   : > { %v1038_v12 = vpack.c.bf16 %v1008_v10, %v459_v11  ;;  %v572_v21 = vpop.f32.mrb[1].mxu1 }
 0x1bf   : > { %v1042_v22 = vpack.c.bf16 %v1015_v20, %v572_v21 }
 0x1c0   : > { %1039 = vmatprep.subr.bf16.mxu0 %v1038_v12 }
 0x1c1   : > { %1041 = vmatpush3.bf16.msra.mxu0 %v1038_v12  ;;  %1044 = vmatprep.subr.msk.bf16.mxu1 %vm1043_vm2, %v1042_v22 }
 0x1c2   : > { %1047 = vmatpush3.bf16.xpose.msk.msra.mxu1 %vm1043_vm2, %v1042_v22 }
 0x1c4   : > { %1021 = vmatmul.mubr.msk.f32.vlgmr.msra.gmra.mrb[2].mxu0 %vm386_vm0, %v349_v13 }
 0x297   : > { %v1022_v16 = vpop.f32.mrb[2].mxu0 }
 0x298   : > { %v653_v17 = vpop.f32.mrb[3].mxu0  ;;  %v666_v18 = vsel %vm662_vm1, %v1022_v16, -inf }
 0x299   : > { %667 = vmax.xlane.f32.xlu1 %v666_v18  ;;  %v663_v19 = vsel %vm662_vm1, %v653_v17, -inf }
 0x29a   : > { %664 = vmax.xlane.f32.xlu0 %v663_v19 }
 0x326   : > { %v668_v23 = vpop.xlane.xlu1 %667 }
 0x327   : > { %v670_v24 = vsub.f32 %v1022_v16, %v668_v23  ;;  %v665_v25 = vpop.xlane.xlu0 %664 }
 0x328   : > { %v669_v26 = vsub.f32 %v653_v17, %v665_v25 }
 0x329   : > { %v673_v27 = vmul.f32 1.442695, %v670_v24 }
 0x32a   : > { %v671_v28 = vmul.f32 1.442695, %v669_v26 }
 0x32c   : > { %1136 = vpow2.f32 %v671_v28 }
 0x32d   : > { %1138 = vpow2.f32 %v673_v27 }
 0x336   : > { %v1137_v29 = vpop.eup %1136 }
 0x337   : > { %v1139_v30 = vpop.eup %1138  ;;  %1027 = vmatprep.mubr.msk.f32.mxu1 %vm662_vm1, %v1137_v29  ;;  %v675_v31 = vsel %vm662_vm1, %v1137_v29, 0.0 }
 0x338   : > { %1028 = vmatmul.mubr.msk.f32.vlgmr.msra.gmra.mrb[2].mxu1 %vm662_vm1, %v1139_v30  ;;  %676 = vadd.xlane.f32.xlu1 %v675_v31  ;;  %v678_v32 = vsel %vm662_vm1, %v1139_v30, 0.0 }
 0x33c   : > { %679 = vadd.xlane.f32.xlu1 %v678_v32 }
 0x3c5   : > { %v677_v33 = vpop.xlane.xlu1 %676 }
 0x3c9   : > { %v680_v34 = vpop.xlane.xlu1 %679 }
 0x3ca   : > { %1140 = vrcp.f32 %v680_v34 }
 0x3cb   : > { %1142 = vrcp.f32 %v677_v33 }
 0x3d4   : > { %v1141_v35 = vpop.eup %1140 }
 0x3d5   : > { %v1143_v37 = vpop.eup %1142 }
 0x40b   : > { %v1029_v36 = vpop.f32.mrb[2].mxu1 }
 0x40c   : > { %v771_v38 = vmul.f32 %v1141_v35, %v1029_v36  ;;  %v761_v39 = vpop.f32.mrb[3].mxu1 }
 0x40d   : > { %v770_v40 = vmul.f32 %v1143_v37, %v761_v39 }
 0x40e   : > { %773 = vst.msk [vmem:[%s327_s9 + $0x8] sm:$0xff] %vm386_vm0, %v771_v38 }
 0x40f   : > { %772 = vst.msk [vmem:[%s327_s9] sm:$0xff] %vm386_vm0, %v770_v40 }
 0x410   : > { %1217 = shalt.err (!%p1214_p11)
}
 0x411   : > { %s1218_s24 = scalar_lea.hbm %s1578_s18, 256  ;;  %s1222_s6 = scalar_lea.hbm %s1638_s4, 1024 }
 0x412   : > { %p1219_p1 = scmp.ne.s32.totalorder %s1578_s18, %s1218_s24  ;;  %p1223_p8 = scmp.lt.u32.totalorder %s1578_s18, %s1638_s4 }
 0x413   : > { %p1224_p0 = scmp.lt.u32.totalorder %s1222_s6, %s1218_s24  ;;  %p1226_p4 = scmp.lt.u32.totalorder %s1218_s24, %s1578_s18 }
 0x414   : > { %p1220_p3 = pnand %p1219_p1, %p1661_p13 }
 0x415   : > { %p1225_p2 = por %p1224_p0, %p1223_p8 }
 0x416   : > { %p1221_p5 = pneg %p1220_p3 }
 0x417   : > { %p1227_p6 = por %p1226_p4, %p1225_p2 }
 0x419   : > { %p1228_p7 = pnand %p1227_p6, %p1221_p5 }
 0x41b   : > { %1231 = shalt.err (!%p1228_p7)
}
 0x41c   : > { %s1313_s21 = smov 128   ;;  %s1314_s9 = smov 8  }
 0x41d   : > { %1052 = dma.vmem_to_hbm [thread:$0]  (%p1661_p13), %s1573_s13, 256, %s1578_s18, %s775_s19, %s1313_s21, %s1313_s21, %s1314_s9  }
 0x41e PF: > { %p1066_p9 = scmp.ge.s32.totalorder %s1306_s22, 2  ;;  %s805_s27 = sand.u32 1, %s1278_s15  }
 0x41f   : > { %p1662_p12 = scmp.ne.s32.totalorder %s1653_s8, 0  ;;  %s806_s7 = scalar_lea.sflag [#allocation4], %s805_s27 }
 0x421   : > { %p1062_p10 = pnand %p1066_p9, %p1662_p12 }
 0x423   : > { %1273 = dma.done.wait (!%p1062_p10), %s806_s7, 256  }
 0x424   : > { %1275 = vsyncadd (!%p1062_p10), %s806_s7, 4294967040  ;;  %s23_s22 = sadd.s32 1, %s1306_s22   ;;  %s1663_s19 = sld [smem:[#allocation11_spill]] }
 0x425   : > { %p20_p11 = scmp.ge.s32.totalorder %s23_s22, 6   ;;  %s1664_s5 = sld [smem:[#allocation12_spill]] }
 0x426   : > { %s1665_s21 = sld [smem:[#allocation13_spill]]  ;;  %s1666_s15 = smov %s1282_s16 }
 0x427   : > { %s1667_s16 = smov %s1286_s17  ;;  %s1668_s17 = smov %s1420_s10 }
 0x428   : > { %s1669_s18 = smov %s1298_s20  ;;  %22 = sbr.rel (!%p20_p11) target bundleno = 11 (0xb), region = 100 }
 0x42b   : > { %s1670_s20 = smov %s1664_s5 }
 0x42f   :  { %811 = vsyncpa [#allocation3], 1 }
 0x430   :  { %813 = vsyncpa [#allocation3 + $0x1], 1 }
 0x431   :  { %814 = vsyncpa [#allocation6], 1 }
 0x432   :  { %816 = vsyncpa [#allocation6 + $0x1], 1 }
 0x433   :  { %817 = vsyncpa [#allocation4], 1 }
 0x434   :  { %819 = vsyncpa [#allocation4 + $0x1], 1 }

</bundles_post_ra>
